<compile_context>
chip_gen: v7x
topology: tpu7x:2x2x1
jax: 0.10.0
libtpu: 0.0.40
codegen_flags: <defaults>
</compile_context>

<pallas_src>
import numpy as np

import jax
import jax.numpy as jnp
from jax import lax
from jax.experimental import pallas as pl
from jax.experimental.pallas import tpu as pltpu


def _cdiv(a, b):
    return -(-a // b)


def _round_up(a, b):
    return _cdiv(a, b) * b


def _vmem_budget_bytes():
    """~3/4 of physical VMEM, with a device_kind-keyed fallback."""
    cap = None
    try:
        info = pltpu.get_tpu_info()
        cap = getattr(info, "vmem_capacity_bytes", None)
    except Exception:
        cap = None
    if not cap:
        kind = ""
        try:
            kind = getattr(jax.devices()[0], "device_kind", "").lower()
        except Exception:
            kind = ""
        if ("v5" in kind) or ("v6" in kind):
            cap = 128 << 20          # v5e / v6e: 128 MiB physical VMEM
        else:
            cap = 64 << 20           # v7x / unknown: be conservative
    return int(cap) * 3 // 4


# ---------------------------------------------------------------------------
# Single-pass kernel: whole problem in one VMEM block (typical depth-map size)
# ---------------------------------------------------------------------------
def _make_single_pass_kernel(*, threshold, total_n):
    def kernel(pred_ref, gt_ref, loss_ref):
        d = pred_ref[...].astype(jnp.float32) - gt_ref[...].astype(jnp.float32)
        # signed global max -> huber_c   (leading-axis reduce, then 2-D reduce)
        c = jnp.float32(threshold) * jnp.max(jnp.max(d, axis=0))
        ad = jnp.abs(d)
        m = ad > c
        s_ad = jnp.sum(jnp.sum(ad, axis=0))
        s_sq = jnp.sum(jnp.sum(jnp.where(m, ad * ad, 0.0), axis=0))
        s_ct = jnp.sum(jnp.sum(jnp.where(m, 1.0, 0.0), axis=0))
        loss_ref[0] = (s_ad + s_sq) / (jnp.float32(total_n) + s_ct)

    return kernel


# ---------------------------------------------------------------------------
# Two-pass streaming kernel (large inputs)
# ---------------------------------------------------------------------------
def _make_two_pass_kernel(*, threshold, total_n, bh, h_tiles, W, rem, ragged,
                          d_resident, res_dtype):
    groups = bh // 8

    def _g8(x):                      # (bh, W) -> (groups, 8, W); layout no-op
        return x.reshape(groups, 8, W)

    def kernel(pred_ref, gt_ref, loss_ref,
               d_ref, mx_ref, sm_ref, sq_ref, ct_ref, c_ref):
        p = pl.program_id(0)         # 0 -> max/sum pass, 1 -> masked-sq pass
        i = pl.program_id(1)         # tile index over (batch, h-chunk)
        last = pl.num_programs(1) - 1
        hi = i % h_tiles             # h-chunk index (used only when ragged)

        @pl.when(jnp.logical_and(p == 0, i == 0))
        def _init():
            mx_ref[...] = jnp.full((8, W), -jnp.inf, dtype=jnp.float32)
            sm_ref[...] = jnp.zeros((8, W), jnp.float32)
            sq_ref[...] = jnp.zeros((8, W), jnp.float32)
            ct_ref[...] = jnp.zeros((8, W), jnp.float32)

        def valid_mask():
            # rows past `rem` in this block are out-of-bounds garbage
            r = lax.broadcasted_iota(jnp.int32, (bh, W), 0)
            return r < rem

        def max_pass(masked):
            d = pred_ref[0].astype(jnp.float32) - gt_ref[0].astype(jnp.float32)
            ad = jnp.abs(d)
            if masked:
                v = valid_mask()
                d = jnp.where(v, d, -jnp.inf)
                ad = jnp.where(v, ad, 0.0)
            if d_resident:
                d_ref[i] = ad.astype(res_dtype)
            mx_ref[...] = jnp.maximum(mx_ref[...], jnp.max(_g8(d), axis=0))
            sm_ref[...] += jnp.sum(_g8(ad), axis=0)   # sum(|d|) hoisted to pass 0

        def sum_pass(masked):
            if d_resident:
                ad = d_ref[i].astype(jnp.float32)
            else:
                d = pred_ref[0].astype(jnp.float32) - gt_ref[0].astype(jnp.float32)
                ad = jnp.abs(d)
            m = ad > c_ref[0]
            if masked:
                m = jnp.logical_and(m, valid_mask())
            sq_ref[...] += jnp.sum(_g8(jnp.where(m, ad * ad, 0.0)), axis=0)
            ct_ref[...] += jnp.sum(_g8(jnp.where(m, 1.0, 0.0)), axis=0)

        @pl.when(p == 0)
        def _p0():
            if ragged:
                @pl.when(hi == h_tiles - 1)
                def _():
                    max_pass(True)

                @pl.when(hi != h_tiles - 1)
                def _():
                    max_pass(False)
            else:
                max_pass(False)

        @pl.when(jnp.logical_and(p == 0, i == last))
        def _huber_c():
            c_ref[0] = jnp.float32(threshold) * jnp.max(mx_ref[...])

        @pl.when(p == 1)
        def _p1():
            if ragged:
                @pl.when(hi == h_tiles - 1)
                def _():
                    sum_pass(True)

                @pl.when(hi != h_tiles - 1)
                def _():
                    sum_pass(False)
            else:
                sum_pass(False)

        @pl.when(jnp.logical_and(p == 1, i == last))
        def _finalize():
            loss_ref[0] = (jnp.sum(sm_ref[...]) + jnp.sum(sq_ref[...])) / (
                jnp.float32(total_n) + jnp.sum(ct_ref[...]))

    return kernel


# ---------------------------------------------------------------------------
# Wrapper
# ---------------------------------------------------------------------------
def berhu_loss(pred, gt, threshold=0.2, *, allow_resident=True,
               resident_dtype=jnp.float32, force_two_pass=False,
               block_rows=None):
    """Pallas BerHu loss.  pred, gt: [B, 1, H, W] (any float dtype). Scalar f32."""
    assert pred.shape == gt.shape, (pred.shape, gt.shape)
    assert pred.ndim >= 2, pred.shape
    H, W = int(pred.shape[-2]), int(pred.shape[-1])
    Bc = int(np.prod(pred.shape[:-2])) if pred.ndim > 2 else 1
    n = Bc * H * W
    itemsize = jnp.dtype(pred.dtype).itemsize
    budget = _vmem_budget_bytes()

    # Collapse leading dims only (for [B,1,H,W] this is a free squeeze).
    p3 = pred.reshape(Bc, H, W)
    g3 = gt.reshape(Bc, H, W)

    # ---------------- single-pass fast path ------------------------------
    single_est = 4 * n * itemsize + 6 * n * 4 + (4 << 20)
    if (not force_two_pass) and single_est <= budget:
        kernel = _make_single_pass_kernel(threshold=float(threshold), total_n=n)
        full_spec = pl.BlockSpec((Bc, H, W), lambda i: (0, 0, 0))
        loss = pl.pallas_call(
            kernel,
            out_shape=jax.ShapeDtypeStruct((1,), jnp.float32),
            grid_spec=pltpu.PrefetchScalarGridSpec(
                num_scalar_prefetch=0,
                grid=(1,),
                in_specs=[full_spec, full_spec],
                out_specs=pl.BlockSpec(memory_space=pltpu.MemorySpace.SMEM),
                scratch_shapes=[]),
            compiler_params=pltpu.CompilerParams(
                dimension_semantics=("arbitrary",),
                vmem_limit_bytes=int(budget)),
        )(p3, g3)
        return loss[0]

    # ---------------- two-pass streaming path ----------------------------
    res_itemsize = jnp.dtype(resident_dtype).itemsize

    def plan(bh_req):
        bh = max(8, (int(bh_req) // 8) * 8)
        bh = min(bh, _round_up(H, 8))
        bh = max(8, (bh // 8) * 8)
        h_tiles = _cdiv(H, bh)
        nt = Bc * h_tiles
        block_in = bh * W * itemsize
        block_f32 = bh * W * 4
        need = 2 * 2 * block_in + 4 * 8 * W * 4 + 6 * block_f32 + (4 << 20)
        d_bytes = nt * bh * W * res_itemsize
        resident = allow_resident and (d_bytes + need <= budget)
        return dict(bh=bh, h_tiles=h_tiles, nt=nt, resident=resident)

    if block_rows is not None:
        chosen = plan(block_rows)
    else:
        big_target = (8 << 20) if budget >= (80 << 20) else (2 << 20)
        big = plan(max(8, big_target // max(1, W * itemsize)))
        small = plan(max(8, (2 << 20) // max(1, W * itemsize)))
        if big["resident"]:
            chosen = big
        elif small["resident"]:
            chosen = small          # shrink tiles to keep |d| resident
        else:
            chosen = big            # re-stream pred/gt with big tiles

    bh, h_tiles, nt = chosen["bh"], chosen["h_tiles"], chosen["nt"]
    d_resident = bool(chosen["resident"])
    ragged = (H % bh) != 0
    rem = H - (h_tiles - 1) * bh     # valid rows in each batch's last h-tile

    if d_resident:
        # Pass 1 pins its input block to the last pass-0 block, so the
        # pipeline issues no input DMA at or after the pass boundary.
        def in_idx(p, i):
            idx = i * (1 - p) + (nt - 1) * p
            return (idx // h_tiles, idx % h_tiles, 0)
        d_scratch = pltpu.VMEM((nt, bh, W), resident_dtype)
    else:
        def in_idx(p, i):
            return (i // h_tiles, i % h_tiles, 0)
        d_scratch = pltpu.VMEM((1, 8, 128), jnp.float32)     # unused dummy

    block = pl.BlockSpec((1, bh, W), in_idx)

    kernel = _make_two_pass_kernel(
        threshold=float(threshold), total_n=n, bh=bh, h_tiles=h_tiles, W=W,
        rem=rem, ragged=ragged, d_resident=d_resident, res_dtype=resident_dtype)

    loss = pl.pallas_call(
        kernel,
        out_shape=jax.ShapeDtypeStruct((1,), jnp.float32),
        grid_spec=pltpu.PrefetchScalarGridSpec(
            num_scalar_prefetch=0,
            grid=(2, nt),                   # (pass, tile); sequential on one TC
            in_specs=[block, block],
            out_specs=pl.BlockSpec(memory_space=pltpu.MemorySpace.SMEM),
            scratch_shapes=[
                d_scratch,                                   # resident |d|
                pltpu.VMEM((8, W), jnp.float32),             # running max(pred-gt)
                pltpu.VMEM((8, W), jnp.float32),             # sum |d|
                pltpu.VMEM((8, W), jnp.float32),             # sum masked d^2
                pltpu.VMEM((8, W), jnp.float32),             # count(mask)
                pltpu.SMEM((1,), jnp.float32),               # huber_c
            ]),
        compiler_params=pltpu.CompilerParams(
            # Both axes must stay sequential: pass 0 must fully precede pass 1
            # and all tiles share the accumulators.
            dimension_semantics=("arbitrary", "arbitrary"),
            vmem_limit_bytes=int(budget)),
    )(p3, g3)
    return loss[0]


def _ref_loss(pred_f32, gt_f32, threshold):
    """float64 numpy reference with the exact PyTorch semantics."""
    p = np.asarray(pred_f32, dtype=np.float64)
    g = np.asarray(gt_f32, dtype=np.float64)
    d = p - g
    huber_c = threshold * d.max()
    diff = np.abs(d)
    mask = diff > huber_c
    return float((diff.sum() + (diff[mask] ** 2).sum()) / (diff.size + mask.sum()))


if __name__ == "__main__":
    key = jax.random.PRNGKey(0)

    cases = [
        # (shape, dtype, kwargs, rel_tol)
        ((2, 1, 16, 16), jnp.float32, {}, 1e-4),                      # tiny, single pass
        ((2, 1, 640, 512), jnp.float32, {}, 1e-4),                    # typical depth map
        ((2, 1, 100, 256), jnp.float32,                               # 2-pass, resident, ragged
         dict(force_two_pass=True, block_rows=24), 1e-4),
        ((2, 1, 96, 256), jnp.float32,                                # 2-pass, resident, no mask
         dict(force_two_pass=True, block_rows=32), 1e-4),
        ((2, 1, 100, 256), jnp.float32,                               # 2-pass, re-stream fallback
         dict(force_two_pass=True, block_rows=24, allow_resident=False), 1e-4),
        ((2, 1, 64, 512), jnp.bfloat16, {}, 1e-4),                    # bf16 inputs, single pass
        ((2, 1, 80, 384), jnp.bfloat16,                               # bf16 resident scratch
         dict(force_two_pass=True, block_rows=24,
              resident_dtype=jnp.bfloat16), 5e-3),
    ]

    for idx, (shape, dtype, kw, tol) in enumerate(cases):
        k1, k2 = jax.random.split(jax.random.fold_in(key, idx))
        pred = jax.random.uniform(k1, shape, dtype=jnp.float32).astype(dtype)
        gt = jax.random.uniform(k2, shape, dtype=jnp.float32).astype(dtype)

        loss = jax.block_until_ready(berhu_loss(pred, gt, threshold=0.2, **kw))

        pred_f = np.asarray(pred.astype(jnp.float32))
        gt_f = np.asarray(gt.astype(jnp.float32))
        ref = _ref_loss(pred_f, gt_f, 0.2)

        assert np.isfinite(float(loss)), (shape, str(dtype), kw, float(loss))
        assert abs(float(loss) - ref) <= tol * max(1.0, abs(ref)), (
            shape, str(dtype), kw, float(loss), ref)

    print("KERNEL_OK")
</pallas_src>

<mosaic_0001>
module attributes {stable_mosaic.version = 11 : i64} {
  func.func @kernel(%arg0: i32, %arg1: memref<2x16x16xf32, #tpu.memory_space<vmem>>, %arg2: memref<2x16x16xf32, #tpu.memory_space<vmem>>, %arg3: memref<1xf32, #tpu.memory_space<smem>>) attributes {dimension_semantics = [#tpu.dimension_semantics<arbitrary>], iteration_bounds = array<i64: 1>, scalar_prefetch = 0 : i64, scratch_operands = 0 : i64, tpu.core_type = #tpu.core_type<tc>, window_params = [{pipeline_mode = #tpu.pipeline_mode<synchronous>, transform_indices = @transform_0, window_bounds = array<i64: 2, 16, 16>}, {pipeline_mode = #tpu.pipeline_mode<synchronous>, transform_indices = @transform_1, window_bounds = array<i64: 2, 16, 16>}, {transform_indices = @transform_2, window_bounds = array<i64: 1>}]} {
    %c0 = arith.constant 0 : index
    %c0_0 = arith.constant 0 : index
    %c0_1 = arith.constant 0 : index
    %0 = vector.load %arg1[%c0, %c0_0, %c0_1] : memref<2x16x16xf32, #tpu.memory_space<vmem>>, vector<2x16x16xf32>
    %c0_2 = arith.constant 0 : index
    %c0_3 = arith.constant 0 : index
    %c0_4 = arith.constant 0 : index
    %1 = vector.load %arg2[%c0_2, %c0_3, %c0_4] : memref<2x16x16xf32, #tpu.memory_space<vmem>>, vector<2x16x16xf32>
    %2 = arith.subf %0, %1 : vector<2x16x16xf32>
    %cst = arith.constant dense<0xFF800000> : vector<16x16xf32>
    %3 = vector.multi_reduction <maximumf>, %2, %cst [0] : vector<2x16x16xf32> to vector<16x16xf32>
    %4 = vector.shape_cast %3 : vector<16x16xf32> to vector<1x16x16xf32>
    %cst_5 = arith.constant dense<0xFF800000> : vector<1xf32>
    %5 = vector.multi_reduction <maximumf>, %4, %cst_5 [1, 2] : vector<1x16x16xf32> to vector<1xf32>
    %6 = vector.shape_cast %5 : vector<1xf32> to vector<1x1x1xf32>
    %7 = vector.extract %6[0, 0, 0] : f32 from vector<1x1x1xf32>
    %cst_6 = arith.constant 2.000000e-01 : f32
    %8 = arith.mulf %cst_6, %7 : f32
    %9 = math.absf %2 : vector<2x16x16xf32>
    %10 = vector.broadcast %8 : f32 to vector<2x16x16xf32>
    %11 = arith.cmpf ogt, %9, %10 : vector<2x16x16xf32>
    %cst_7 = arith.constant dense<0.000000e+00> : vector<16x16xf32>
    %12 = vector.multi_reduction <add>, %9, %cst_7 [0] : vector<2x16x16xf32> to vector<16x16xf32>
    %13 = vector.shape_cast %12 : vector<16x16xf32> to vector<1x16x16xf32>
    %cst_8 = arith.constant dense<0.000000e+00> : vector<1xf32>
    %14 = vector.multi_reduction <add>, %13, %cst_8 [1, 2] : vector<1x16x16xf32> to vector<1xf32>
    %15 = vector.shape_cast %14 : vector<1xf32> to vector<1x1x1xf32>
    %16 = vector.extract %15[0, 0, 0] : f32 from vector<1x1x1xf32>
    %17 = arith.mulf %9, %9 : vector<2x16x16xf32>
    %cst_9 = arith.constant 0.000000e+00 : f32
    %18 = vector.broadcast %cst_9 : f32 to vector<2x16x16xf32>
    %19 = arith.select %11, %17, %18 : vector<2x16x16xi1>, vector<2x16x16xf32>
    %cst_10 = arith.constant dense<0.000000e+00> : vector<16x16xf32>
    %20 = vector.multi_reduction <add>, %19, %cst_10 [0] : vector<2x16x16xf32> to vector<16x16xf32>
    %21 = vector.shape_cast %20 : vector<16x16xf32> to vector<1x16x16xf32>
    %cst_11 = arith.constant dense<0.000000e+00> : vector<1xf32>
    %22 = vector.multi_reduction <add>, %21, %cst_11 [1, 2] : vector<1x16x16xf32> to vector<1xf32>
    %23 = vector.shape_cast %22 : vector<1xf32> to vector<1x1x1xf32>
    %24 = vector.extract %23[0, 0, 0] : f32 from vector<1x1x1xf32>
    %cst_12 = arith.constant 1.000000e+00 : f32
    %cst_13 = arith.constant 0.000000e+00 : f32
    %25 = vector.broadcast %cst_12 : f32 to vector<2x16x16xf32>
    %26 = vector.broadcast %cst_13 : f32 to vector<2x16x16xf32>
    %27 = arith.select %11, %25, %26 : vector<2x16x16xi1>, vector<2x16x16xf32>
    %cst_14 = arith.constant dense<0.000000e+00> : vector<16x16xf32>
    %28 = vector.multi_reduction <add>, %27, %cst_14 [0] : vector<2x16x16xf32> to vector<16x16xf32>
    %29 = vector.shape_cast %28 : vector<16x16xf32> to vector<1x16x16xf32>
    %cst_15 = arith.constant dense<0.000000e+00> : vector<1xf32>
    %30 = vector.multi_reduction <add>, %29, %cst_15 [1, 2] : vector<1x16x16xf32> to vector<1xf32>
    %31 = vector.shape_cast %30 : vector<1xf32> to vector<1x1x1xf32>
    %32 = vector.extract %31[0, 0, 0] : f32 from vector<1x1x1xf32>
    %33 = arith.addf %16, %24 : f32
    %cst_16 = arith.constant 5.120000e+02 : f32
    %34 = arith.addf %cst_16, %32 : f32
    %35 = arith.divf %33, %34 : f32
    %c0_17 = arith.constant 0 : index
    %36 = memref.load %arg3[%c0_17] : memref<1xf32, #tpu.memory_space<smem>>
    memref.store %35, %arg3[%c0_17] : memref<1xf32, #tpu.memory_space<smem>>
    return
  }
  func.func @transform_0(%arg0: i32) -> (i32, i32, i32) {
    %c0_i32 = arith.constant 0 : i32
    %c0_i32_0 = arith.constant 0 : i32
    %c0_i32_1 = arith.constant 0 : i32
    %c0_i32_2 = arith.constant 0 : i32
    return %c0_i32, %c0_i32_0, %c0_i32_1 : i32, i32, i32
  }
  func.func @transform_1(%arg0: i32) -> (i32, i32, i32) {
    %c0_i32 = arith.constant 0 : i32
    %c0_i32_0 = arith.constant 0 : i32
    %c0_i32_1 = arith.constant 0 : i32
    %c0_i32_2 = arith.constant 0 : i32
    return %c0_i32, %c0_i32_0, %c0_i32_1 : i32, i32, i32
  }
  func.func @transform_2(%arg0: i32) -> i32 {
    %c0_i32 = arith.constant 0 : i32
    %c0_i32_0 = arith.constant 0 : i32
    return %c0_i32 : i32
  }
}

</mosaic_0001>

<bundles_post_ra>
// kernel: tpu_custom_call.1
= control target key start
LH: loop header
LB: loop body
LE: loop exit
PB: predicated region body
PF: predicated region fallthrough
CT: control target
= control target key end

     0   :  { %7 = vsyncpa [#allocation3], 0  ;;  %s329_s0 = inlined_call_operand.hbm [shape: f32[2,16,16], index: 0, kind: input, shape index: {}]   ;;  %s330_s1 = inlined_call_operand.hbm [shape: f32[2,16,16], index: 1, kind: input, shape index: {}]   ;;  %s331_s2 = inlined_call_operand.hbm [shape: f32[1], index: 2, kind: output, shape index: {}]  }
   0x1   :  { %8 = vsyncpa [#allocation6], 0 }
   0x2   :  { %9 = vsyncpa [#allocation4], 0  ;;  %s248_s9 = smov [#allocation2]   ;;  %s188_s13 = scalar_lea.hbm %s329_s0, 512 }
   0x3   :  { %s15_s10 = sshll.u32 %s248_s9, 4  ;;  %p189_p0 = scmp.ne.s32.totalorder %s329_s0, %s188_s13  ;;  %s16_s10 = int_to_ptr.vmem [resolvable:$true] %s15_s10 }
   0x4   :  { %p192_p1 = scmp.lt.u32.totalorder %s188_s13, %s329_s0 }
   0x6   :  { %p194_p2 = pnand %p192_p1, %p189_p0 }
   0x8   :  { %197 = shalt.err (!%p194_p2)
}
   0x9   :  { %s198_s18 = scalar_lea.vmem %s16_s10, 512  ;;  %p203_p4 = scmp.lt.s32.totalorder %s16_s10, %s16_s10 }
   0xa   :  { %p199_p3 = scmp.ne.s32.totalorder %s16_s10, %s198_s18  ;;  %p204_p5 = scmp.lt.s32.totalorder %s198_s18, %s198_s18 }
   0xc   :  { %p205_p6 = por %p204_p5, %p203_p4 }
   0xe   :  { %p206_p7 = pnand %p205_p6, %p199_p3 }
  0x10   :  { %209 = shalt.err (!%p206_p7)
}
  0x11   :  { %s249_s19 = smov 128   ;;  %s250_s20 = smov 8  }
  0x12   :  { %21 = dma.hbm_to_vmem [thread:$0]  %s329_s0, 512, %s16_s10, [#allocation3], %s249_s19, %s249_s19, %s250_s20  }
  0x13   :  { %s251_s23 = smov [#allocation5]   ;;  %s210_s27 = scalar_lea.hbm %s330_s1, 512 }
  0x14   :  { %s27_s24 = sshll.u32 %s251_s23, 4  ;;  %p211_p8 = scmp.ne.s32.totalorder %s330_s1, %s210_s27  ;;  %s28_s24 = int_to_ptr.vmem [resolvable:$true] %s27_s24 }
  0x15   :  { %p214_p9 = scmp.lt.u32.totalorder %s210_s27, %s330_s1 }
  0x17   :  { %p216_p10 = pnand %p214_p9, %p211_p8 }
  0x19   :  { %219 = shalt.err (!%p216_p10)
}
  0x1a   :  { %s220_s4 = scalar_lea.vmem %s28_s24, 512  ;;  %p225_p12 = scmp.lt.s32.totalorder %s28_s24, %s28_s24 }
  0x1b   :  { %p221_p11 = scmp.ne.s32.totalorder %s28_s24, %s220_s4  ;;  %p226_p13 = scmp.lt.s32.totalorder %s220_s4, %s220_s4 }
  0x1d   :  { %p227_p0 = por %p226_p13, %p225_p12 }
  0x1f   :  { %p228_p1 = pnand %p227_p0, %p221_p11 }
  0x21   :  { %231 = shalt.err (!%p228_p1)
}
  0x22   :  { %33 = dma.hbm_to_vmem [thread:$0]  %s330_s1, 512, %s28_s24, [#allocation6], %s249_s19, %s249_s19, %s250_s20  }
  0x23   :  { %242 = dma.done.wait [#allocation3], 512  }
  0x24   :  { %243 = vsyncadd [#allocation3], 4294966784 }
  0x25   :  { %244 = dma.done.wait [#allocation6], 512  }
  0x26   :  { %245 = vsyncadd [#allocation6], 4294966784  ;;  %v40_v0 = vld [vmem:[#allocation2] sm:$0xff]  ;;  %v41_v1 = vld [vmem:[#allocation2 + $0x8] sm:$0xff]  ;;  %vm52_vm0 = vcmask 130048   ;;  %v252_v46 = vmov 0.0  }
  0x27   :  { %v42_v2 = vld [vmem:[#allocation2 + $0x10] sm:$0xff]  ;;  %v43_v3 = vld [vmem:[#allocation2 + $0x18] sm:$0xff]  ;;  %v44_v4 = vld [vmem:[#allocation5] sm:$0xff]  ;;  %s232_s16 = scalar_lea.hbm %s331_s2, 16 }
  0x28   :  { %v45_v5 = vld [vmem:[#allocation5 + $0x8] sm:$0xff]  ;;  %v46_v6 = vld [vmem:[#allocation5 + $0x10] sm:$0xff]  ;;  %v47_v7 = vld [vmem:[#allocation5 + $0x18] sm:$0xff]  ;;  %v48_v8 = vsub.f32 %v40_v0, %v44_v4  ;;  %p233_p2 = scmp.ne.s32.totalorder %s331_s2, %s232_s16  ;;  %p236_p3 = scmp.lt.u32.totalorder %s232_s16, %s331_s2 }
  0x29   :  { %v49_v9 = vsub.f32 %v41_v1, %v45_v5  ;;  %v50_v10 = vsub.f32 %v42_v2, %v46_v6  ;;  %v51_v11 = vsub.f32 %v43_v3, %v47_v7 }
  0x2a   :  { %v53_v12 = vsel %vm52_vm0, %v48_v8, -inf  ;;  %v72_v21 = vand.u32 2147483647, %v48_v8  ;;  %p238_p4 = pnand %p236_p3, %p233_p2 }
  0x2b   :  { %v56_v13 = vsel %vm52_vm0, %v49_v9, -inf  ;;  %v54_v14 = vsel %vm52_vm0, %v50_v10, -inf  ;;  %v57_v15 = vsel %vm52_vm0, %v51_v11, -inf  ;;  %v73_v22 = vand.u32 2147483647, %v49_v9 }
  0x2c   :  { %v55_v16 = vmax.f32 %v53_v12, %v54_v14  ;;  %v58_v17 = vmax.f32 %v56_v13, %v57_v15  ;;  %v74_v23 = vand.u32 2147483647, %v50_v10  ;;  %v75_v24 = vand.u32 2147483647, %v51_v11 }
  0x2d   :  { %v81_v25 = vsel %vm52_vm0, %v72_v21, 0.0  ;;  %v84_v27 = vsel %vm52_vm0, %v73_v22, 0.0  ;;  %v99_v41 = vmul.f32 %v72_v21, %v72_v21  ;;  %v100_v42 = vmul.f32 %v73_v22, %v73_v22 }
  0x2e   :  { %v59_v18 = vsel %vm52_vm0, %v55_v16, -inf  ;;  %v60_v19 = vsel %vm52_vm0, %v58_v17, -inf  ;;  %v82_v26 = vsel %vm52_vm0, %v74_v23, 0.0  ;;  %v85_v29 = vsel %vm52_vm0, %v75_v24, 0.0 }
  0x2f   :  { %v61_v20 = vmax.f32 %v59_v18, %v60_v19  ;;  %v83_v28 = vadd.f32 %v82_v26, %v81_v25  ;;  %v86_v30 = vadd.f32 %v85_v29, %v84_v27  ;;  %v101_v43 = vmul.f32 %v74_v23, %v74_v23 }
  0x30   :  { %v102_v44 = vmul.f32 %v75_v24, %v75_v24 }
  0x31   :  { %62 = vmax.xlane.f32.xlu0 %v61_v20  ;;  %v87_v31 = vsel %vm52_vm0, %v83_v28, 0.0  ;;  %v88_v32 = vsel %vm52_vm0, %v86_v30, 0.0 }
  0x32   :  { %v89_v33 = vadd.f32 %v88_v32, %v87_v31 }
  0x35   :  { %90 = vadd.xlane.f32.xlu0 %v89_v33 }
  0xbe   :  { %v63_v34 = vpop.xlane.xlu0 %62 }
  0xbf   :  { %v64_v35 = vrot.slane %v63_v34, 4 }
  0xc1   :  { %v65_v36 = vmax.f32 %v63_v34, %v64_v35 }
  0xc2   :  { %v91_v9 = vpop.xlane.xlu0 %90 }
  0xc3   :  { %v66_v37 = vrot.slane %v65_v36, 2  ;;  %v92_v10 = vrot.slane %v91_v9, 4 }
  0xc5   :  { %v67_v38 = vmax.f32 %v65_v36, %v66_v37  ;;  %v93_v11 = vadd.f32 %v92_v10, %v91_v9 }
  0xc7   :  { %v68_v39 = vrot.slane %v67_v38, 1  ;;  %v94_v12 = vrot.slane %v93_v11, 2 }
  0xc9   :  { %v69_v40 = vmax.f32 %v67_v38, %v68_v39  ;;  %v95_v13 = vadd.f32 %v94_v12, %v93_v11 }
  0xcb   :  { %170 = vpush %v69_v40  ;;  %v96_v14 = vrot.slane %v95_v13, 1 }
  0xcd   :  { %v97_v15 = vadd.f32 %v96_v14, %v95_v13 }
  0xcf   :  { %172 = vpush %v97_v15 }
  0xfc   :  { %s171_s1 = spop %170 }
  0xfd   :  { %s71_s6 = smul.f32 0.2, %s171_s1 }
  0xff   :  { %v76_v45 = vstv %s71_s6 }
 0x100   :  { %vm77_vm1 = vcmp.gt.f32.partialorder %v72_v21, %v76_v45  ;;  %vm78_vm2 = vcmp.gt.f32.partialorder %v73_v22, %v76_v45  ;;  %vm79_vm3 = vcmp.gt.f32.partialorder %v74_v23, %v76_v45  ;;  %vm80_vm4 = vcmp.gt.f32.partialorder %v75_v24, %v76_v45  ;;  %s173_s7 = spop %172 }
 0x101   :  { %v125_v47 = vsel %vm77_vm1, 1.0, %v252_v46  ;;  %v126_v48 = vsel %vm78_vm2, 1.0, %v252_v46  ;;  %v127_v49 = vsel %vm79_vm3, 1.0, %v252_v46  ;;  %v128_v50 = vsel %vm80_vm4, 1.0, %v252_v46 }
 0x102   :  { %v103_v51 = vsel %vm77_vm1, %v99_v41, 0.0  ;;  %v104_v52 = vsel %vm78_vm2, %v100_v42, 0.0  ;;  %v105_v53 = vsel %vm79_vm3, %v101_v43, 0.0  ;;  %v106_v54 = vsel %vm80_vm4, %v102_v44, 0.0 }
 0x103   :  { %v107_v55 = vsel %vm52_vm0, %v103_v51, 0.0  ;;  %v108_v56 = vsel %vm52_vm0, %v105_v53, 0.0  ;;  %v110_v57 = vsel %vm52_vm0, %v104_v52, 0.0  ;;  %v111_v58 = vsel %vm52_vm0, %v106_v54, 0.0 }
 0x104   :  { %v109_v59 = vadd.f32 %v108_v56, %v107_v55  ;;  %v112_v60 = vadd.f32 %v111_v58, %v110_v57  ;;  %v129_v61 = vsel %vm52_vm0, %v125_v47, 0.0  ;;  %v130_v62 = vsel %vm52_vm0, %v127_v49, 0.0 }
 0x105   :  { %v131_v63 = vadd.f32 %v130_v62, %v129_v61  ;;  %v132_v0 = vsel %vm52_vm0, %v126_v48, 0.0  ;;  %v133_v1 = vsel %vm52_vm0, %v128_v50, 0.0 }
 0x106   :  { %v113_v2 = vsel %vm52_vm0, %v109_v59, 0.0  ;;  %v114_v3 = vsel %vm52_vm0, %v112_v60, 0.0  ;;  %v134_v4 = vadd.f32 %v133_v1, %v132_v0 }
 0x107   :  { %v115_v5 = vadd.f32 %v114_v3, %v113_v2  ;;  %v135_v6 = vsel %vm52_vm0, %v131_v63, 0.0 }
 0x108   :  { %v136_v7 = vsel %vm52_vm0, %v134_v4, 0.0 }
 0x109   :  { %116 = vadd.xlane.f32.xlu1 %v115_v5  ;;  %v137_v8 = vadd.f32 %v136_v7, %v135_v6 }
 0x10d   :  { %138 = vadd.xlane.f32.xlu1 %v137_v8 }
 0x196   :  { %v117_v16 = vpop.xlane.xlu1 %116 }
 0x197   :  { %v118_v17 = vrot.slane %v117_v16, 4 }
 0x199   :  { %v119_v18 = vadd.f32 %v118_v17, %v117_v16 }
 0x19a   :  { %v139_v19 = vpop.xlane.xlu1 %138 }
 0x19b   :  { %v120_v20 = vrot.slane %v119_v18, 2  ;;  %v140_v21 = vrot.slane %v139_v19, 4 }
 0x19d   :  { %v141_v22 = vadd.f32 %v140_v21, %v139_v19  ;;  %v121_v23 = vadd.f32 %v120_v20, %v119_v18 }
 0x19f   :  { %v142_v24 = vrot.slane %v141_v22, 2  ;;  %v122_v25 = vrot.slane %v121_v23, 1 }
 0x1a1   :  { %v143_v26 = vadd.f32 %v142_v24, %v141_v22  ;;  %v123_v27 = vadd.f32 %v122_v25, %v121_v23 }
 0x1a3   :  { %174 = vpush %v123_v27  ;;  %v144_v28 = vrot.slane %v143_v26, 1 }
 0x1a5   :  { %v145_v29 = vadd.f32 %v144_v28, %v143_v26 }
 0x1a7   :  { %176 = vpush %v145_v29 }
 0x1d4   :  { %s175_s8 = spop %174 }
 0x1d5   :  { %s147_s11 = sadd.f32 %s175_s8, %s173_s7 }
 0x1d8   :  { %s177_s9 = spop %176 }
 0x1d9   :  { %s148_s10 = sadd.f32 512.0, %s177_s9 }
 0x1db   :  { %v149_v30 = vstv %s148_s10 }
 0x1dc   :  { %186 = vrcp.f32 %v149_v30 }
 0x1e6   :  { %v187_v31 = vpop.eup %186 }
 0x1e7   :  { %178 = vpush %v187_v31 }
 0x218   :  { %s179_s12 = spop %178 }
 0x219   :  { %s152_s13 = smul.f32 %s179_s12, %s147_s11 }
 0x21b   :  { %154 = sst [smem:[#allocation7]] %s152_s13 }
 0x21c   :  { %241 = shalt.err (!%p238_p4)
}
 0x21d   :  { %s253_s21 = smov [#allocation7]  }
 0x21e   :  { %162 = dma.smem_to_hbm %s253_s21, 16, %s331_s2, [#allocation4]  }
 0x21f   :  { %246 = dma.done.wait [#allocation4], 16  }
 0x220   :  { %247 = vsyncadd [#allocation4], 4294967280 }
 0x221   :  { %166 = sfence }
 0x222   :  { %167 = vsyncpa [#allocation3], 1 }
 0x223   :  { %168 = vsyncpa [#allocation6], 1 }
 0x224   :  { %169 = vsyncpa [#allocation4], 1 }

</bundles_post_ra>
